<compile_context>
chip_gen: v6e
topology: v6e:2x2x1
jax: 0.10.0
libtpu: 0.0.40
codegen_flags: <defaults>
</compile_context>

<pallas_src>
import functools
import math

import jax
import jax.numpy as jnp
from jax import lax
from jax.experimental import pallas as pl
from jax.experimental.pallas import tpu as pltpu

# Hyper-parameters of the PyTorch module (deterministic, from __init__).
W_WEIGHT = 10.0
ALPHA = 2.1
OMEGA = 14.0
EPSILON = 1.0
THETA = 0.5
MAP_THRESHOLD = 0.2

LANES = 128
SUBLANES = 8
MAX_BLOCK_ROWS = 4096          # 4096 * 128 * 4 B = 2 MiB per input per block


def _awing_partial_kernel(yp_ref, y_ref, o_ref, *, valid_rows, needs_row_mask):
    """Computes an (8, 128) partial sum of the weighted AWing loss for one block."""
    yp = yp_ref[...].astype(jnp.float32)
    y = y_ref[...].astype(jnp.float32)

    if needs_row_mask:
        # Ragged last block: rows past `valid_rows` contain unspecified data.
        # Zeroing the inputs there makes those elements contribute exactly 0
        # (loss(0, 0) == 0 and its weight is W*0 + 1 == 1).
        block_rows = yp.shape[0]
        rid = pl.program_id(0) * block_rows + lax.broadcasted_iota(
            jnp.int32, yp.shape, 0)
        valid = rid < valid_rows
        zero = jnp.zeros_like(yp)
        yp = jnp.where(valid, yp, zero)
        y = jnp.where(valid, y, zero)

    alpha = jnp.float32(ALPHA)
    omega = jnp.float32(OMEGA)
    theta = jnp.float32(THETA)
    inv_eps = jnp.float32(1.0 / EPSILON)
    log_ratio = jnp.float32(math.log(THETA / EPSILON))   # compile-time constant
    inv_ratio = jnp.float32(EPSILON / THETA)

    d = jnp.abs(y - yp)
    exp_y = alpha - y                                    # alpha - y (> 0 for y <= alpha)

    # pw    = (theta/eps) ** (alpha - y)
    # pw_m1 = (theta/eps) ** (alpha - y - 1) = pw * (eps/theta)   (saves one exp)
    pw = jnp.exp(exp_y * log_ratio)
    pw_m1 = pw * inv_ratio

    A = omega * exp_y * pw_m1 * inv_eps / (1.0 + pw)
    C = theta * A - omega * jnp.log1p(pw)

    # case1 (|d| < theta): omega * log(1 + (d/eps) ** (alpha - y)),
    # with torch semantics 0 ** p == 0 for p > 0.
    d_scaled = d * inv_eps
    tiny = jnp.float32(1e-30)
    powed = jnp.exp(exp_y * jnp.log(jnp.maximum(d_scaled, tiny)))
    powed = jnp.where(d_scaled > 0.0, powed, jnp.zeros_like(powed))
    case1 = omega * jnp.log1p(powed)
    # case2 (|d| >= theta): A * d - C
    case2 = A * d - C
    loss = jnp.where(d < theta, case1, case2)

    # weight map: M = (y > 0.2) ? 1 : 0 ; weight = W*M + 1
    m = (y > jnp.float32(MAP_THRESHOLD)).astype(jnp.float32)
    weighted = loss * (jnp.float32(W_WEIGHT) * m + 1.0)

    # Reduce the (block_rows, 128) block to one (8, 128) vreg of partial sums:
    # pure vreg-wise VPU adds; the expensive cross-lane reduce happens exactly
    # once, outside the kernel.
    o_ref[...] = jnp.sum(weighted.reshape(-1, SUBLANES, LANES), axis=0)


@jax.jit
def weighted_adaptive_wing_loss(y_pred, y):
    """Forward pass of WeightedAdaptiveWingLoss; returns a scalar f32 mean."""
    assert y_pred.shape == y.shape
    n_elem = y_pred.size

    yp = jnp.ravel(y_pred).astype(jnp.float32)
    yt = jnp.ravel(y).astype(jnp.float32)

    # Pad only when the flat length is not a multiple of the 128-lane width
    # (zero padding is neutral: loss(0, 0) == 0 and its weight is 1, so the
    # padded elements contribute exactly 0; the mean divides by n_elem).
    if n_elem % LANES != 0:
        pad = LANES - n_elem % LANES
        yp = jnp.pad(yp, (0, pad))
        yt = jnp.pad(yt, (0, pad))

    rows = yp.shape[0] // LANES
    yp2d = yp.reshape(rows, LANES)
    yt2d = yt.reshape(rows, LANES)

    # Large streaming blocks; for small inputs shrink to (rows rounded up to a
    # multiple of 8) so the block still satisfies the (8, 128) tiling rule.
    block_rows = min(MAX_BLOCK_ROWS, ((rows + SUBLANES - 1) // SUBLANES) * SUBLANES)
    num_blocks = pl.cdiv(rows, block_rows)
    needs_row_mask = (num_blocks * block_rows) != rows

    kernel = functools.partial(
        _awing_partial_kernel,
        valid_rows=rows,
        needs_row_mask=needs_row_mask,
    )

    partials = pl.pallas_call(
        kernel,
        out_shape=jax.ShapeDtypeStruct((num_blocks * SUBLANES, LANES), jnp.float32),
        grid_spec=pltpu.PrefetchScalarGridSpec(
            num_scalar_prefetch=0,
            grid=(num_blocks,),
            in_specs=[
                pl.BlockSpec((block_rows, LANES), lambda i: (i, 0)),
                pl.BlockSpec((block_rows, LANES), lambda i: (i, 0)),
            ],
            out_specs=pl.BlockSpec((SUBLANES, LANES), lambda i: (i, 0)),
        ),
        compiler_params=pltpu.CompilerParams(
            # Independent per-block partial sums -> grid can shard across both
            # TensorCores on v7x (harmless on single-TC v5e/v6e).
            dimension_semantics=("parallel",),
            # 2 MiB/input blocks double-buffered ~= 8 MiB; lift v5e's 16 MiB
            # scoped default to give the pipeline comfortable headroom.
            vmem_limit_bytes=32 * 1024 * 1024,
        ),
    )(yp2d, yt2d)

    # Single cheap final reduction + mean over the ORIGINAL element count.
    return jnp.sum(partials) / jnp.float32(n_elem)


def _reference(y_pred, y):
    """Pure-JAX reference matching the PyTorch module, for sanity checking."""
    d = jnp.abs(y - y_pred)
    exp_y = ALPHA - y
    ratio = THETA / EPSILON
    pw = ratio ** exp_y
    A = OMEGA * (1.0 / (1.0 + pw)) * exp_y * ratio ** (exp_y - 1.0) / EPSILON
    C = THETA * A - OMEGA * jnp.log(1.0 + pw)
    case1 = OMEGA * jnp.log(1.0 + jnp.abs(d / EPSILON) ** exp_y)
    case2 = A * d - C
    loss = jnp.where(d < THETA, case1, case2)
    m = jnp.where(y > MAP_THRESHOLD, 1.0, 0.0)
    return jnp.mean(loss * (W_WEIGHT * m + 1.0))


if __name__ == "__main__":
    key = jax.random.PRNGKey(0)
    k1, k2, k3, k4 = jax.random.split(key, 4)

    # Primary test: NCHW heatmap-like inputs (divides evenly into lane tiles).
    shape = (2, 4, 16, 16)
    y_pred = jax.random.uniform(k1, shape, dtype=jnp.float32)
    y_true = jax.random.uniform(k2, shape, dtype=jnp.float32)

    out = weighted_adaptive_wing_loss(y_pred, y_true)
    out = jax.block_until_ready(out)
    ref = _reference(y_pred, y_true)
    assert jnp.allclose(out, ref, rtol=1e-5, atol=1e-5), (out, ref)

    # Secondary test: awkward size exercising the lane-pad + ragged-block
    # row-masking path.
    shape2 = (3, 5, 17, 19)
    y_pred2 = jax.random.uniform(k3, shape2, dtype=jnp.float32)
    y_true2 = jax.random.uniform(k4, shape2, dtype=jnp.float32)
    out2 = jax.block_until_ready(weighted_adaptive_wing_loss(y_pred2, y_true2))
    ref2 = _reference(y_pred2, y_true2)
    assert jnp.allclose(out2, ref2, rtol=1e-5, atol=1e-5), (out2, ref2)

    print("KERNEL_OK")
</pallas_src>

<mosaic_0001>
module attributes {stable_mosaic.version = 11 : i64} {
  func.func @_awing_partial_kernel(%arg0: i32, %arg1: memref<16x128xf32, #tpu.memory_space<vmem>>, %arg2: memref<16x128xf32, #tpu.memory_space<vmem>>, %arg3: memref<8x128xf32, #tpu.memory_space<vmem>>) attributes {dimension_semantics = [#tpu.dimension_semantics<parallel>], iteration_bounds = array<i64: 1>, scalar_prefetch = 0 : i64, scratch_operands = 0 : i64, tpu.core_type = #tpu.core_type<tc>, window_params = [{transform_indices = @transform_0, window_bounds = array<i64: 16, 128>}, {transform_indices = @transform_1, window_bounds = array<i64: 16, 128>}, {transform_indices = @transform_2, window_bounds = array<i64: 8, 128>}]} {
    %c0 = arith.constant 0 : index
    %c0_0 = arith.constant 0 : index
    %0 = vector.load %arg1[%c0, %c0_0] : memref<16x128xf32, #tpu.memory_space<vmem>>, vector<16x128xf32>
    %c0_1 = arith.constant 0 : index
    %c0_2 = arith.constant 0 : index
    %1 = vector.load %arg2[%c0_1, %c0_2] : memref<16x128xf32, #tpu.memory_space<vmem>>, vector<16x128xf32>
    %2 = arith.subf %1, %0 : vector<16x128xf32>
    %3 = math.absf %2 : vector<16x128xf32>
    %cst = arith.constant 2.100000e+00 : f32
    %4 = vector.broadcast %cst : f32 to vector<16x128xf32>
    %5 = arith.subf %4, %1 : vector<16x128xf32>
    %cst_3 = arith.constant -0.693147182 : f32
    %6 = vector.broadcast %cst_3 : f32 to vector<16x128xf32>
    %7 = arith.mulf %5, %6 : vector<16x128xf32>
    %8 = math.exp %7 : vector<16x128xf32>
    %cst_4 = arith.constant 2.000000e+00 : f32
    %9 = vector.broadcast %cst_4 : f32 to vector<16x128xf32>
    %10 = arith.mulf %8, %9 : vector<16x128xf32>
    %cst_5 = arith.constant 1.400000e+01 : f32
    %11 = vector.broadcast %cst_5 : f32 to vector<16x128xf32>
    %12 = arith.mulf %11, %5 : vector<16x128xf32>
    %13 = arith.mulf %12, %10 : vector<16x128xf32>
    %cst_6 = arith.constant 1.000000e+00 : f32
    %14 = vector.broadcast %cst_6 : f32 to vector<16x128xf32>
    %15 = arith.mulf %13, %14 : vector<16x128xf32>
    %cst_7 = arith.constant 1.000000e+00 : f32
    %16 = vector.broadcast %cst_7 : f32 to vector<16x128xf32>
    %17 = arith.addf %16, %8 : vector<16x128xf32>
    %18 = arith.divf %15, %17 : vector<16x128xf32>
    %cst_8 = arith.constant 5.000000e-01 : f32
    %19 = vector.broadcast %cst_8 : f32 to vector<16x128xf32>
    %20 = arith.mulf %19, %18 : vector<16x128xf32>
    %21 = math.log1p %8 : vector<16x128xf32>
    %cst_9 = arith.constant 1.400000e+01 : f32
    %22 = vector.broadcast %cst_9 : f32 to vector<16x128xf32>
    %23 = arith.mulf %22, %21 : vector<16x128xf32>
    %24 = arith.subf %20, %23 : vector<16x128xf32>
    %cst_10 = arith.constant 1.000000e+00 : f32
    %25 = vector.broadcast %cst_10 : f32 to vector<16x128xf32>
    %26 = arith.mulf %3, %25 : vector<16x128xf32>
    %cst_11 = arith.constant 1.000000e-30 : f32
    %27 = vector.broadcast %cst_11 : f32 to vector<16x128xf32>
    %28 = arith.maximumf %26, %27 : vector<16x128xf32>
    %29 = math.log %28 : vector<16x128xf32>
    %30 = arith.mulf %5, %29 : vector<16x128xf32>
    %31 = math.exp %30 : vector<16x128xf32>
    %cst_12 = arith.constant 0.000000e+00 : f32
    %32 = vector.broadcast %cst_12 : f32 to vector<16x128xf32>
    %33 = arith.cmpf ogt, %26, %32 : vector<16x128xf32>
    %cst_13 = arith.constant 0.000000e+00 : f32
    %34 = vector.broadcast %cst_13 : f32 to vector<16x128xf32>
    %35 = arith.select %33, %31, %34 : vector<16x128xi1>, vector<16x128xf32>
    %36 = math.log1p %35 : vector<16x128xf32>
    %cst_14 = arith.constant 1.400000e+01 : f32
    %37 = vector.broadcast %cst_14 : f32 to vector<16x128xf32>
    %38 = arith.mulf %37, %36 : vector<16x128xf32>
    %39 = arith.mulf %18, %3 : vector<16x128xf32>
    %40 = arith.subf %39, %24 : vector<16x128xf32>
    %cst_15 = arith.constant 5.000000e-01 : f32
    %41 = vector.broadcast %cst_15 : f32 to vector<16x128xf32>
    %42 = arith.cmpf olt, %3, %41 : vector<16x128xf32>
    %43 = arith.select %42, %38, %40 : vector<16x128xi1>, vector<16x128xf32>
    %cst_16 = arith.constant 2.000000e-01 : f32
    %44 = vector.broadcast %cst_16 : f32 to vector<16x128xf32>
    %45 = arith.cmpf ogt, %1, %44 : vector<16x128xf32>
    %46 = arith.extui %45 : vector<16x128xi1> to vector<16x128xi32>
    %47 = arith.sitofp %46 : vector<16x128xi32> to vector<16x128xf32>
    %cst_17 = arith.constant 1.000000e+01 : f32
    %48 = vector.broadcast %cst_17 : f32 to vector<16x128xf32>
    %49 = arith.mulf %48, %47 : vector<16x128xf32>
    %cst_18 = arith.constant 1.000000e+00 : f32
    %50 = vector.broadcast %cst_18 : f32 to vector<16x128xf32>
    %51 = arith.addf %49, %50 : vector<16x128xf32>
    %52 = arith.mulf %43, %51 : vector<16x128xf32>
    %53 = vector.shape_cast %52 : vector<16x128xf32> to vector<2x8x128xf32>
    %cst_19 = arith.constant dense<0.000000e+00> : vector<8x128xf32>
    %54 = vector.multi_reduction <add>, %53, %cst_19 [0] : vector<2x8x128xf32> to vector<8x128xf32>
    %c0_20 = arith.constant 0 : index
    %c0_21 = arith.constant 0 : index
    %55 = vector.load %arg3[%c0_20, %c0_21] : memref<8x128xf32, #tpu.memory_space<vmem>>, vector<8x128xf32>
    tpu.vector_store %arg3[%c0_20, %c0_21], %54 {strides = array<i32>} : memref<8x128xf32, #tpu.memory_space<vmem>>, vector<8x128xf32>,
    return
  }
  func.func @transform_0(%arg0: i32) -> (i32, i32) {
    %c0_i32 = arith.constant 0 : i32
    %c0_i32_0 = arith.constant 0 : i32
    return %arg0, %c0_i32 : i32, i32
  }
  func.func @transform_1(%arg0: i32) -> (i32, i32) {
    %c0_i32 = arith.constant 0 : i32
    %c0_i32_0 = arith.constant 0 : i32
    return %arg0, %c0_i32 : i32, i32
  }
  func.func @transform_2(%arg0: i32) -> (i32, i32) {
    %c0_i32 = arith.constant 0 : i32
    %c0_i32_0 = arith.constant 0 : i32
    return %arg0, %c0_i32 : i32, i32
  }
}

</mosaic_0001>

<bundles_post_ra>
// kernel: weighted_adaptive_wing_loss.1
= control target key start
LH: loop header
LB: loop body
LE: loop exit
PB: predicated region body
PF: predicated region fallthrough
CT: control target
= control target key end

     0   :  { %s205_s0 = inlined_call_operand.vmem [shape: f32[16,128], index: 0, kind: input, shape index: {}]   ;;  %s206_s1 = inlined_call_operand.vmem [shape: f32[16,128], index: 1, kind: input, shape index: {}]   ;;  %s207_s2 = inlined_call_operand.vmem [shape: f32[8,128], index: 2, kind: output, shape index: {}]  }
   0x1   :  { %v11_v0 = vld [vmem:[%s205_s0] sm:$0xff]  ;;  %v12_v1 = vld [vmem:[%s205_s0 + $0x8] sm:$0xff] }
   0x2   :  { %v177_v2 = vld [vmem:[%s206_s1] sm:$0xff]  ;;  %v182_v3 = vld [vmem:[%s206_s1 + $0x8] sm:$0xff] }
   0x3   :  { %v15_v4 = vsub.f32 %v177_v2, %v11_v0  ;;  %v19_v5 = vsub.f32 2.1, %v177_v2  ;;  %v16_v6 = vsub.f32 %v182_v3, %v12_v1  ;;  %v20_v7 = vsub.f32 2.1, %v182_v3 }
   0x4   :  { %vm107_vm4 = vcmp.gt.f32.partialorder %v177_v2, 0.2  ;;  %vm108_vm5 = vcmp.gt.f32.partialorder %v182_v3, 0.2 }
   0x5   :  { %v188_v8 = vand.u32 2147483647, %v15_v4  ;;  %v21_v9 = vmul.f32 -0.6931472, %v19_v5  ;;  %v190_v10 = vand.u32 2147483647, %v16_v6 }
   0x6   :  { %v22_v11 = vmul.f32 -0.6931472, %v20_v7  ;;  %v29_v32 = vmul.f32 14.0, %v19_v5  ;;  %v30_v35 = vmul.f32 14.0, %v20_v7 }
   0x7   :  { %v23_v12 = vmul.f32 1.442695, %v21_v9  ;;  %v63_v13 = vmax.f32 %v188_v8, 1e-30  ;;  %v64_v14 = vmax.f32 %v190_v10, 1e-30 }
   0x8   :  { %v25_v15 = vmul.f32 1.442695, %v22_v11  ;;  %vm75_vm0 = vcmp.gt.f32.partialorder %v188_v8, 0.0  ;;  %vm76_vm1 = vcmp.gt.f32.partialorder %v190_v10, 0.0  ;;  %vm103_vm8 = vcmp.lt.f32.partialorder %v188_v8, 0.5 }
   0x9   :  { %128 = vpow2.f32 %v23_v12  ;;  %vm104_vm9 = vcmp.lt.f32.partialorder %v190_v10, 0.5 }
   0xa   :  { %130 = vlog2.f32 %v63_v13 }
   0xb   :  { %132 = vlog2.f32 %v64_v14 }
   0xc   :  { %134 = vpow2.f32 %v25_v15 }
  0x16   :  { %v129_v16 = vpop.eup %128 }
  0x17   :  { %v131_v17 = vpop.eup %130  ;;  %v33_v22 = vadd.f32 1.0, %v129_v16  ;;  %v44_v28 = vmul.f32 -0.5, %v129_v16  ;;  %v27_v31 = vmul.f32 2.0, %v129_v16  ;;  %v47_v38 = vand.u32 2147483647, %v129_v16 }
  0x18   :  { %v133_v18 = vpop.eup %132  ;;  %v66_v19 = vmul.f32 0.6931472, %v131_v17 }
  0x19   :  { %v68_v20 = vmul.f32 0.6931472, %v133_v18  ;;  %v135_v21 = vpop.eup %134  ;;  %136 = vlog2.f32 %v33_v22  ;;  %v45_v36 = vadd.f32 1.0, %v44_v28  ;;  %v31_v45 = vmul.f32 %v29_v32, %v27_v31 }
  0x1a   :  { %v69_v23 = vmul.f32 %v66_v19, %v19_v5  ;;  %v34_v25 = vadd.f32 1.0, %v135_v21  ;;  %v53_v29 = vmul.f32 -0.5, %v135_v21  ;;  %v28_v34 = vmul.f32 2.0, %v135_v21 }
  0x1b   :  { %v70_v24 = vmul.f32 %v68_v20, %v20_v7  ;;  %v56_v42 = vand.u32 2147483647, %v135_v21  ;;  %v46_v50 = vmul.f32 %v129_v16, %v45_v36  ;;  %vm48_vm2 = vcmp.lt.f32.partialorder %v47_v38, 0.0004427343 }
  0x1c   :  { %v71_v26 = vmul.f32 1.442695, %v69_v23  ;;  %v54_v39 = vadd.f32 1.0, %v53_v29  ;;  %v32_v48 = vmul.f32 %v30_v35, %v28_v34  ;;  %v152_v5 = vmov 0.0  }
  0x1d   :  { %v73_v27 = vmul.f32 1.442695, %v70_v24  ;;  %vm57_vm3 = vcmp.lt.f32.partialorder %v56_v42, 0.0004427343  ;;  %v125_v6 = vsel %vm107_vm4, 1.0, %v152_v5  ;;  %v126_v9 = vsel %vm108_vm5, 1.0, %v152_v5 }
  0x1e   :  { %138 = vpow2.f32 %v71_v26  ;;  %v55_v53 = vmul.f32 %v135_v21, %v54_v39  ;;  %v113_v15 = vmul.f32 10.0, %v125_v6  ;;  %v114_v17 = vmul.f32 10.0, %v126_v9 }
  0x1f   :  { %140 = vpow2.f32 %v73_v27 }
  0x20   :  { %142 = vlog2.f32 %v34_v25  ;;  %v115_v24 = vadd.f32 1.0, %v113_v15  ;;  %v116_v27 = vadd.f32 1.0, %v114_v17 }
  0x21   :  { %144 = vrcp.f32 %v33_v22 }
  0x22   :  { %146 = vrcp.f32 %v34_v25 }
  0x26   :  { %v137_v30 = vpop.eup %136 }
  0x27   :  { %v43_v49 = vmul.f32 0.6931472, %v137_v30 }
  0x29   :  { %v49_v56 = vsel %vm48_vm2, %v46_v50, %v43_v49 }
  0x2a   :  { %v59_v61 = vmul.f32 14.0, %v49_v56 }
  0x2b   :  { %v139_v33 = vpop.eup %138 }
  0x2c   :  { %v141_v37 = vpop.eup %140  ;;  %v77_v40 = vsel %vm75_vm0, %v139_v33, 0.0 }
  0x2d   :  { %v143_v41 = vpop.eup %142  ;;  %v78_v43 = vsel %vm76_vm1, %v141_v37, 0.0  ;;  %v79_v44 = vadd.f32 1.0, %v77_v40  ;;  %v82_v57 = vmul.f32 -0.5, %v77_v40  ;;  %v85_v1 = vand.u32 2147483647, %v77_v40 }
  0x2e   :  { %v88_v46 = vadd.f32 1.0, %v78_v43  ;;  %v145_v47 = vpop.eup %144  ;;  %v52_v52 = vmul.f32 0.6931472, %v143_v41  ;;  %v91_v59 = vmul.f32 -0.5, %v78_v43  ;;  %v94_v7 = vand.u32 2147483647, %v78_v43 }
  0x2f   :  { %148 = vlog2.f32 %v79_v44  ;;  %v147_v51 = vpop.eup %146  ;;  %v36_v54 = vmul.f32 %v145_v47, %v31_v45  ;;  %v83_v0 = vadd.f32 1.0, %v82_v57  ;;  %vm86_vm6 = vcmp.lt.f32.partialorder %v85_v1, 0.0004427343 }
  0x30   :  { %150 = vlog2.f32 %v88_v46  ;;  %v38_v55 = vmul.f32 %v147_v51, %v32_v48  ;;  %v58_v58 = vsel %vm57_vm3, %v55_v53, %v52_v52  ;;  %v92_v4 = vadd.f32 1.0, %v91_v59 }
  0x31   :  { %v39_v60 = vmul.f32 0.5, %v36_v54  ;;  %v60_v63 = vmul.f32 14.0, %v58_v58  ;;  %v99_v12 = vmul.f32 %v36_v54, %v188_v8  ;;  %v84_v14 = vmul.f32 %v83_v0, %v77_v40 }
  0x32   :  { %v40_v62 = vmul.f32 0.5, %v38_v55  ;;  %v100_v2 = vmul.f32 %v38_v55, %v190_v10  ;;  %v93_v3 = vmul.f32 %v92_v4, %v78_v43  ;;  %vm95_vm7 = vcmp.lt.f32.partialorder %v94_v7, 0.0004427343 }
  0x33   :  { %v61_v11 = vsub.f32 %v39_v60, %v59_v61 }
  0x34   :  { %v62_v13 = vsub.f32 %v40_v62, %v60_v63 }
  0x35   :  { %v101_v21 = vsub.f32 %v99_v12, %v61_v11 }
  0x36   :  { %v102_v23 = vsub.f32 %v100_v2, %v62_v13 }
  0x3c   :  { %v149_v16 = vpop.eup %148 }
  0x3d   :  { %v151_v18 = vpop.eup %150  ;;  %v81_v19 = vmul.f32 0.6931472, %v149_v16 }
  0x3e   :  { %v90_v20 = vmul.f32 0.6931472, %v151_v18 }
  0x3f   :  { %v87_v22 = vsel %vm86_vm6, %v84_v14, %v81_v19 }
  0x40   :  { %v96_v25 = vsel %vm95_vm7, %v93_v3, %v90_v20  ;;  %v97_v26 = vmul.f32 14.0, %v87_v22 }
  0x41   :  { %v98_v28 = vmul.f32 14.0, %v96_v25 }
  0x42   :  { %v105_v29 = vsel %vm103_vm8, %v97_v26, %v101_v21 }
  0x43   :  { %v106_v30 = vsel %vm104_vm9, %v98_v28, %v102_v23  ;;  %v117_v31 = vmul.f32 %v115_v24, %v105_v29 }
  0x44   :  { %v118_v32 = vmul.f32 %v116_v27, %v106_v30 }
  0x46   :  { %v119_v33 = vadd.f32 %v118_v32, %v117_v31 }
  0x48   :  { %120 = vst [vmem:[%s207_s2] sm:$0xff] %v119_v33 }

</bundles_post_ra>
